<compile_context>
chip_gen: v5e
topology: v5e:2x2
jax: 0.10.0
libtpu: 0.0.40
codegen_flags: <defaults>
</compile_context>

<pallas_src>
import functools

import jax
import jax.numpy as jnp
from jax.experimental import pallas as pl
from jax.experimental.pallas import tpu as pltpu

_VMEM_WHOLE = pl.BlockSpec(memory_space=pltpu.MemorySpace.VMEM)

# Fused single-kernel path is used when the f32 slab [B, H*W, C] is at most this big.
_FUSED_BYTES_LIMIT = 2 * 1024 * 1024      # 2 MiB
_TILE_BYTES_BUDGET = 2 * 1024 * 1024      # per-tile budget for the tiled path
_TILE_MAX_ROWS = 512                      # ~HBM-roofline sweet spot, bounded VMEM


# ------------------------------ Pallas kernels ---------------------------------
def _se_gate(m, w1_ref, w2_ref):
    # m: [B, C] pooled activations -> channel gate [B, C]
    h = jnp.maximum(jnp.dot(m, w1_ref[...], preferred_element_type=jnp.float32), 0.0)
    return jax.nn.sigmoid(jnp.dot(h, w2_ref[...], preferred_element_type=jnp.float32))


def _se_fused_kernel(x_ref, w1_ref, w2_ref, o_ref, *, inv_s):
    # Whole activation resident in VMEM: pool + FCs + scale in one pass.
    x = x_ref[...]                               # [B, S, C]
    m = jnp.sum(x, axis=1) * inv_s               # global average pool   [B, C]
    y = _se_gate(m, w1_ref, w2_ref)              # channel gate          [B, C]
    o_ref[...] = x * y[:, None, :]


def _pool_fc_kernel(x_ref, w1_ref, w2_ref, y_ref, acc_ref, *, inv_s):
    # Grid over spatial tiles ("arbitrary" reduction axis).  Accumulate per-(b,c)
    # sums in a VMEM scratch; run the tiny FC->ReLU->FC->sigmoid on the last step.
    t = pl.program_id(0)

    @pl.when(t == 0)
    def _():
        acc_ref[...] = jnp.zeros_like(acc_ref)

    acc_ref[...] += jnp.sum(x_ref[...], axis=1)  # partial spatial sums  [B, C]

    @pl.when(t == pl.num_programs(0) - 1)
    def _():
        y_ref[...] = _se_gate(acc_ref[...] * inv_s, w1_ref, w2_ref)


def _scale_kernel(x_ref, y_ref, o_ref):
    # x_ref: [B, TS, C] spatial tile;  y_ref: [B, C] gate (resident across the grid)
    o_ref[...] = x_ref[...] * y_ref[...][:, None, :]


# ------------------------------- wrappers ---------------------------------------
def _spatial_tile(S, B, C):
    """Largest multiple-of-8 divisor of S keeping one [B, TS, C] f32 tile in budget."""
    row_bytes = B * C * 4
    cap = max(8, min(_TILE_MAX_ROWS, _TILE_BYTES_BUDGET // max(row_bytes, 1)))
    if S <= cap or S % 8 != 0:
        return S
    best = 8
    for t in range(8, min(S, cap) + 1, 8):
        if S % t == 0:
            best = t
    return best


def se_block_forward(x_nchw, w1, w2):
    """SEBlock forward.

    x_nchw: [B, C, H, W] float32 (NCHW, like the PyTorch module).
    w1: [C, C//r]   (transposed fc[0].weight, bias-free)
    w2: [C//r, C]   (transposed fc[2].weight, bias-free)
    Returns [B, C, H, W] float32.
    """
    B, C, H, W = x_nchw.shape
    S = H * W
    chid = w1.shape[1]
    inv_s = 1.0 / float(S)

    # NCHW -> [B, S, C]: channels on the 128-wide lane axis.
    x = jnp.transpose(x_nchw, (0, 2, 3, 1)).reshape(B, S, C).astype(jnp.float32)

    if B * S * C * 4 <= _FUSED_BYTES_LIMIT:
        # Small activation: single fused kernel, one HBM round trip.
        out = pl.pallas_call(
            functools.partial(_se_fused_kernel, inv_s=inv_s),
            out_shape=jax.ShapeDtypeStruct((B, S, C), jnp.float32),
            in_specs=[_VMEM_WHOLE] * 3,
            out_specs=_VMEM_WHOLE,
            compiler_params=pltpu.CompilerParams(vmem_limit_bytes=32 * 1024 * 1024),
        )(x, w1, w2)
    else:
        ts = _spatial_tile(S, B, C)
        grid = (S // ts,)

        # Squeeze (tiled spatial reduction) + excite (tiny FCs), fused in one call.
        y = pl.pallas_call(
            functools.partial(_pool_fc_kernel, inv_s=inv_s),
            out_shape=jax.ShapeDtypeStruct((B, C), jnp.float32),
            grid_spec=pltpu.PrefetchScalarGridSpec(
                num_scalar_prefetch=0,
                grid=grid,
                in_specs=[
                    pl.BlockSpec((B, ts, C), lambda t: (0, t, 0)),
                    pl.BlockSpec((C, chid), lambda t: (0, 0)),
                    pl.BlockSpec((chid, C), lambda t: (0, 0)),
                ],
                out_specs=pl.BlockSpec((B, C), lambda t: (0, 0)),
                scratch_shapes=[pltpu.VMEM((B, C), jnp.float32)],
            ),
            compiler_params=pltpu.CompilerParams(
                dimension_semantics=("arbitrary",)),
        )(x, w1, w2)

        # Broadcast-scale, tiled over H*W; "parallel" shards across v7x's 2 TCs.
        out = pl.pallas_call(
            _scale_kernel,
            out_shape=jax.ShapeDtypeStruct((B, S, C), jnp.float32),
            grid_spec=pltpu.PrefetchScalarGridSpec(
                num_scalar_prefetch=0,
                grid=grid,
                in_specs=[
                    pl.BlockSpec((B, ts, C), lambda t: (0, t, 0)),
                    pl.BlockSpec((B, C), lambda t: (0, 0)),
                ],
                out_specs=pl.BlockSpec((B, ts, C), lambda t: (0, t, 0)),
            ),
            compiler_params=pltpu.CompilerParams(
                dimension_semantics=("parallel",)),
        )(x, y)

    return jnp.transpose(out.reshape(B, H, W, C), (0, 3, 1, 2))


# ------------------------------- reference & test --------------------------------
def _reference(x_nchw, w1, w2):
    m = jnp.mean(x_nchw, axis=(2, 3))
    h = jnp.maximum(m @ w1, 0.0)
    y = jax.nn.sigmoid(h @ w2)
    return x_nchw * y[:, :, None, None]


if __name__ == "__main__":
    root = jax.random.PRNGKey(0)
    kx1, kx2, kw1, kw2, kw3, kw4 = jax.random.split(root, 6)
    R = 4

    # --- small input -> fused single-kernel path ---------------------------------
    B, C, H, W = 2, 128, 16, 16
    x = jax.random.normal(kx1, (B, C, H, W), jnp.float32)          # NCHW like PyTorch
    lim1, lim2 = 1.0 / (C ** 0.5), 1.0 / ((C // R) ** 0.5)
    w1 = jax.random.uniform(kw1, (C, C // R), jnp.float32, -lim1, lim1)   # fc[0].weight.T
    w2 = jax.random.uniform(kw2, (C // R, C), jnp.float32, -lim2, lim2)   # fc[2].weight.T
    out = jax.jit(se_block_forward)(x, w1, w2)
    jax.block_until_ready(out)
    assert out.shape == x.shape and out.dtype == jnp.float32
    assert jnp.allclose(out, _reference(x, w1, w2), rtol=1e-2, atol=1e-2)

    # --- larger input -> tiled (reduction grid + parallel scale grid) path --------
    B2, C2, H2, W2 = 2, 256, 64, 64
    x2 = jax.random.normal(kx2, (B2, C2, H2, W2), jnp.float32)
    lim1, lim2 = 1.0 / (C2 ** 0.5), 1.0 / ((C2 // R) ** 0.5)
    w1b = jax.random.uniform(kw3, (C2, C2 // R), jnp.float32, -lim1, lim1)
    w2b = jax.random.uniform(kw4, (C2 // R, C2), jnp.float32, -lim2, lim2)
    out2 = jax.jit(se_block_forward)(x2, w1b, w2b)
    jax.block_until_ready(out2)
    assert out2.shape == x2.shape and out2.dtype == jnp.float32
    assert jnp.allclose(out2, _reference(x2, w1b, w2b), rtol=1e-2, atol=1e-2)

    print("KERNEL_OK")
</pallas_src>

<mosaic_0001>
module attributes {stable_mosaic.version = 11 : i64} {
  func.func @_se_fused_kernel(%arg0: memref<2x256x128xf32, #tpu.memory_space<vmem>>, %arg1: memref<128x32xf32, #tpu.memory_space<vmem>>, %arg2: memref<32x128xf32, #tpu.memory_space<vmem>>, %arg3: memref<2x256x128xf32, #tpu.memory_space<vmem>>) attributes {dimension_semantics = [], scalar_prefetch = 0 : i64, scratch_operands = 0 : i64, tpu.core_type = #tpu.core_type<tc>} {
    %c0 = arith.constant 0 : index
    %c0_0 = arith.constant 0 : index
    %c0_1 = arith.constant 0 : index
    %0 = vector.load %arg0[%c0, %c0_0, %c0_1] : memref<2x256x128xf32, #tpu.memory_space<vmem>>, vector<2x256x128xf32>
    %cst = arith.constant dense<0.000000e+00> : vector<2x128xf32>
    %1 = vector.multi_reduction <add>, %0, %cst [1] : vector<2x256x128xf32> to vector<2x128xf32>
    %cst_2 = arith.constant 3.906250e-03 : f32
    %2 = vector.broadcast %cst_2 : f32 to vector<2x128xf32>
    %3 = arith.mulf %1, %2 : vector<2x128xf32>
    %c0_3 = arith.constant 0 : index
    %c0_4 = arith.constant 0 : index
    %4 = vector.load %arg1[%c0_3, %c0_4] : memref<128x32xf32, #tpu.memory_space<vmem>>, vector<128x32xf32>
    %cst_5 = arith.constant dense<0.000000e+00> : vector<2x32xf32>
    %5 = tpu.matmul %3, %4, %cst_5 {dimension_numbers = #tpu.dot_dimension_numbers<[1], [0], [0], [1], [0, 0, 1, 1], [], []>} : vector<2x128xf32>, vector<128x32xf32>, vector<2x32xf32> -> vector<2x32xf32>
    %cst_6 = arith.constant 0.000000e+00 : f32
    %6 = vector.broadcast %cst_6 : f32 to vector<2x32xf32>
    %7 = arith.maximumf %5, %6 : vector<2x32xf32>
    %c0_7 = arith.constant 0 : index
    %c0_8 = arith.constant 0 : index
    %8 = vector.load %arg2[%c0_7, %c0_8] : memref<32x128xf32, #tpu.memory_space<vmem>>, vector<32x128xf32>
    %cst_9 = arith.constant dense<0.000000e+00> : vector<2x128xf32>
    %9 = tpu.matmul %7, %8, %cst_9 {dimension_numbers = #tpu.dot_dimension_numbers<[1], [0], [0], [1], [0, 0, 1, 1], [], []>} : vector<2x32xf32>, vector<32x128xf32>, vector<2x128xf32> -> vector<2x128xf32>
    %10 = arith.negf %9 : vector<2x128xf32>
    %11 = math.exp %10 : vector<2x128xf32>
    %cst_10 = arith.constant 1.000000e+00 : f32
    %12 = vector.broadcast %cst_10 : f32 to vector<2x128xf32>
    %13 = arith.addf %12, %11 : vector<2x128xf32>
    %14 = arith.divf %12, %13 : vector<2x128xf32>
    %15 = vector.shape_cast %14 : vector<2x128xf32> to vector<2x1x128xf32>
    %16 = vector.broadcast %15 : vector<2x1x128xf32> to vector<2x256x128xf32>
    %17 = arith.mulf %0, %16 : vector<2x256x128xf32>
    %c0_11 = arith.constant 0 : index
    %c0_12 = arith.constant 0 : index
    %c0_13 = arith.constant 0 : index
    %18 = vector.load %arg3[%c0_11, %c0_12, %c0_13] : memref<2x256x128xf32, #tpu.memory_space<vmem>>, vector<2x256x128xf32>
    tpu.vector_store %arg3[%c0_11, %c0_12, %c0_13], %17 {strides = array<i32>} : memref<2x256x128xf32, #tpu.memory_space<vmem>>, vector<2x256x128xf32>,
    return
  }
}

</mosaic_0001>

<bundles_post_ra>
// kernel: se_block_forward.1
= control target key start
LH: loop header
LB: loop body
LE: loop exit
PB: predicated region body
PF: predicated region fallthrough
CT: control target
= control target key end

     0   :  { %8 = vsyncpa [#allocation3], 0  ;;  %s861_s0 = inlined_call_operand.hbm [shape: f32[2,256,128], index: 0, kind: input, shape index: {}]   ;;  %s862_s1 = inlined_call_operand.vmem [shape: f32[128,32], index: 1, kind: input, shape index: {}]   ;;  %s863_s2 = inlined_call_operand.vmem [shape: f32[32,128], index: 2, kind: input, shape index: {}]   ;;  %s864_s3 = inlined_call_operand.hbm [shape: f32[2,256,128], index: 3, kind: output, shape index: {}]  }
   0x1   :  { %9 = vsyncpa [#allocation4], 0  ;;  %s14_s14 = sshll.u32 %s861_s0, 4  ;;  %s475_s15 = smov [#allocation2]   ;;  %s15_s14 = int_to_ptr.hbm [resolvable:$true] %s14_s14 }
   0x2   :  { %s16_s16 = sshll.u32 %s475_s15, 4  ;;  %s476_s17 = smov 128   ;;  %s17_s16 = int_to_ptr.vmem [resolvable:$true] %s16_s16 }
   0x3   :  { %s477_s18 = smov 8  }
   0x4   :  { %22 = dma.hbm_to_vmem [thread:$0]  %s15_s14, 8192, %s17_s16, [#allocation3], %s476_s17, %s476_s17, %s477_s18  }
   0x5   :  { %471 = dma.done.wait [#allocation3], 8192  }
   0x6   :  { %472 = vsyncadd [#allocation3], 4294959104  ;;  %v186_v0 = vld [vmem:[%s862_s1 + $0x78] sm:$0xff]  ;;  %v185_v1 = vld [vmem:[%s862_s1 + $0x70] sm:$0xff]  ;;  %vm189_vm0 = vcmask 1041409   ;;  %vm217_vm1 = vcmask 261120  }
   0x7   :  { %192 = vmatpush.msra.mxu0 %v186_v0  ;;  %v184_v2 = vld [vmem:[%s862_s1 + $0x68] sm:$0xff]  ;;  %v183_v3 = vld [vmem:[%s862_s1 + $0x60] sm:$0xff]  ;;  %v182_v6 = vld [vmem:[%s862_s1 + $0x58] sm:$0xff]  ;;  %s400_s7 = sshll.u32 %s864_s3, 4  ;;  %s401_s7 = int_to_ptr.hbm [resolvable:$true] %s400_s7 }
   0x8   :  { %v517_v4 = vld [vmem:[#allocation2] sm:$0xff]  ;;  %v519_v5 = vld [vmem:[#allocation2 + $0x8] sm:$0xff]  ;;  %v524_v7 = vld [vmem:[#allocation2 + $0x10] sm:$0xff] }
   0x9   :  { %193 = vmatpush.msra.mxu0 %v185_v1  ;;  %v95_v8 = vadd.f32 %v519_v5, %v517_v4  ;;  %v528_v9 = vld [vmem:[#allocation2 + $0x18] sm:$0xff]  ;;  %v181_v10 = vld [vmem:[%s862_s1 + $0x50] sm:$0xff]  ;;  %v534_v12 = vld [vmem:[#allocation2 + $0x20] sm:$0xff] }
   0xa   :  { %v180_v13 = vld [vmem:[%s862_s1 + $0x48] sm:$0xff]  ;;  %v179_v16 = vld [vmem:[%s862_s1 + $0x40] sm:$0xff]  ;;  %v546_v18 = vld [vmem:[#allocation2 + $0x30] sm:$0xff] }
   0xb   :  { %194 = vmatpush.msra.mxu0 %v184_v2  ;;  %v96_v11 = vadd.f32 %v95_v8, %v524_v7  ;;  %v540_v15 = vld [vmem:[#allocation2 + $0x28] sm:$0xff]  ;;  %v178_v19 = vld [vmem:[%s862_s1 + $0x38] sm:$0xff]  ;;  %v177_v21 = vld [vmem:[%s862_s1 + $0x30] sm:$0xff] }
   0xc   :  { %v555_v22 = vld [vmem:[#allocation2 + $0x38] sm:$0xff]  ;;  %v557_v23 = vld [vmem:[#allocation2 + $0x100] sm:$0xff]  ;;  %v559_v24 = vld [vmem:[#allocation2 + $0x108] sm:$0xff] }
   0xd   :  { %195 = vmatpush.msra.mxu0 %v183_v3  ;;  %v97_v14 = vadd.f32 %v96_v11, %v528_v9  ;;  %v561_v25 = vld [vmem:[#allocation2 + $0x110] sm:$0xff]  ;;  %v564_v27 = vld [vmem:[#allocation2 + $0x40] sm:$0xff]  ;;  %v132_v28 = vadd.f32 %v559_v24, %v557_v23  ;;  %v176_v29 = vld [vmem:[%s862_s1 + $0x28] sm:$0xff] }
   0xe   :  { %v571_v30 = vld [vmem:[#allocation2 + $0x118] sm:$0xff]  ;;  %v574_v32 = vld [vmem:[#allocation2 + $0x48] sm:$0xff]  ;;  %v175_v34 = vld [vmem:[%s862_s1 + $0x20] sm:$0xff] }
   0xf   :  { %196 = vmatpush.msra.mxu0 %v182_v6  ;;  %v98_v17 = vadd.f32 %v97_v14, %v534_v12  ;;  %v133_v33 = vadd.f32 %v132_v28, %v561_v25  ;;  %v580_v35 = vld [vmem:[#allocation2 + $0x120] sm:$0xff]  ;;  %v583_v37 = vld [vmem:[#allocation2 + $0x50] sm:$0xff]  ;;  %v174_v39 = vld [vmem:[%s862_s1 + $0x18] sm:$0xff] }
  0x10   :  { %v589_v40 = vld [vmem:[#allocation2 + $0x128] sm:$0xff]  ;;  %v592_v42 = vld [vmem:[#allocation2 + $0x58] sm:$0xff]  ;;  %v173_v44 = vld [vmem:[%s862_s1 + $0x10] sm:$0xff] }
  0x11   :  { %197 = vmatpush.msra.mxu0 %v181_v10  ;;  %v99_v20 = vadd.f32 %v98_v17, %v540_v15  ;;  %v134_v38 = vadd.f32 %v133_v33, %v571_v30  ;;  %v598_v45 = vld [vmem:[#allocation2 + $0x130] sm:$0xff]  ;;  %v601_v47 = vld [vmem:[#allocation2 + $0x60] sm:$0xff]  ;;  %v172_v49 = vld [vmem:[%s862_s1 + $0x8] sm:$0xff] }
  0x12   :  { %v607_v50 = vld [vmem:[#allocation2 + $0x138] sm:$0xff]  ;;  %v610_v52 = vld [vmem:[#allocation2 + $0x68] sm:$0xff]  ;;  %v171_v54 = vld [vmem:[%s862_s1] sm:$0xff] }
  0x13   :  { %198 = vmatpush.msra.mxu0 %v180_v13  ;;  %v100_v26 = vadd.f32 %v99_v20, %v546_v18  ;;  %v135_v43 = vadd.f32 %v134_v38, %v580_v35  ;;  %v616_v55 = vld [vmem:[#allocation2 + $0x140] sm:$0xff]  ;;  %v619_v57 = vld [vmem:[#allocation2 + $0x70] sm:$0xff]  ;;  %v622_v59 = vld [vmem:[#allocation2 + $0x148] sm:$0xff] }
  0x14   :  { %v625_v61 = vld [vmem:[#allocation2 + $0x78] sm:$0xff]  ;;  %v628_v63 = vld [vmem:[#allocation2 + $0x150] sm:$0xff]  ;;  %v631_v1 = vld [vmem:[#allocation2 + $0x80] sm:$0xff] }
  0x15   :  { %199 = vmatpush.msra.mxu0 %v179_v16  ;;  %v101_v31 = vadd.f32 %v100_v26, %v555_v22  ;;  %v136_v48 = vadd.f32 %v135_v43, %v589_v40  ;;  %v634_v3 = vld [vmem:[#allocation2 + $0x158] sm:$0xff]  ;;  %v637_v8 = vld [vmem:[#allocation2 + $0x88] sm:$0xff]  ;;  %v640_v11 = vld [vmem:[#allocation2 + $0x160] sm:$0xff] }
  0x16   :  { %883 = vst [vmem:[#allocation8_spill] sm:$0xff] %v634_v3  ;;  %v643_v14 = vld [vmem:[#allocation2 + $0x90] sm:$0xff]  ;;  %v646_v17 = vld [vmem:[#allocation2 + $0x168] sm:$0xff]  ;;  %v649_v20 = vld [vmem:[#allocation2 + $0x98] sm:$0xff] }
  0x17   :  { %200 = vmatpush.msra.mxu0 %v178_v19  ;;  %v102_v36 = vadd.f32 %v101_v31, %v564_v27  ;;  %v137_v53 = vadd.f32 %v136_v48, %v598_v45  ;;  %884 = vst [vmem:[#allocation9_spill] sm:$0xff] %v640_v11  ;;  %v652_v26 = vld [vmem:[#allocation2 + $0x170] sm:$0xff]  ;;  %v658_v33 = vld [vmem:[#allocation2 + $0x178] sm:$0xff] }
  0x18   :  { %885 = vst [vmem:[#allocation10_spill] sm:$0xff] %v646_v17  ;;  %v667_v43 = vld [vmem:[#allocation2 + $0xb0] sm:$0xff] }
  0x19   :  { %201 = vmatpush.msra.mxu0 %v177_v21  ;;  %v103_v41 = vadd.f32 %v102_v36, %v574_v32  ;;  %v138_v58 = vadd.f32 %v137_v53, %v607_v50  ;;  %886 = vst [vmem:[#allocation11_spill] sm:$0xff] %v652_v26  ;;  %v661_v36 = vld [vmem:[#allocation2 + $0xa8] sm:$0xff]  ;;  %v676_v53 = vld [vmem:[#allocation2 + $0x190] sm:$0xff] }
  0x1a   :  { %887 = vst [vmem:[#allocation12_spill] sm:$0xff] %v658_v33 }
  0x1b   :  { %202 = vmatpush.msra.mxu0 %v176_v29  ;;  %v104_v46 = vadd.f32 %v103_v41, %v583_v37  ;;  %v139_v62 = vadd.f32 %v138_v58, %v616_v55  ;;  %v655_v29 = vld [vmem:[#allocation2 + $0xa0] sm:$0xff]  ;;  %890 = vst [vmem:[#allocation15_spill] sm:$0xff] %v676_v53 }
  0x1d   :  { %203 = vmatpush.msra.mxu0 %v175_v34  ;;  %v105_v51 = vadd.f32 %v104_v46, %v592_v42  ;;  %v140_v2 = vadd.f32 %v139_v62, %v622_v59  ;;  %v670_v46 = vld [vmem:[#allocation2 + $0x188] sm:$0xff] }
  0x1e   :  { %889 = vst [vmem:[#allocation14_spill] sm:$0xff] %v670_v46 }
  0x1f   :  { %204 = vmatpush.msra.mxu0 %v174_v39  ;;  %v106_v56 = vadd.f32 %v105_v51, %v601_v47  ;;  %v141_v10 = vadd.f32 %v140_v2, %v628_v63  ;;  %v664_v39 = vld [vmem:[#allocation2 + $0x180] sm:$0xff] }
  0x20   :  { %888 = vst [vmem:[#allocation13_spill] sm:$0xff] %v664_v39 }
  0x21   :  { %205 = vmatpush.msra.mxu0 %v173_v44  ;;  %v107_v60 = vadd.f32 %v106_v56, %v610_v52  ;;  %v142_v16 = vadd.f32 %v141_v10, %v634_v3  ;;  %v679_v56 = vld [vmem:[#allocation2 + $0xc0] sm:$0xff] }
  0x23   :  { %206 = vmatpush.msra.mxu0 %v172_v49  ;;  %v108_v0 = vadd.f32 %v107_v60, %v619_v57  ;;  %v143_v21 = vadd.f32 %v142_v16, %v640_v11  ;;  %v673_v49 = vld [vmem:[#allocation2 + $0xb8] sm:$0xff] }
  0x24   :  { %v682_v60 = vld [vmem:[#allocation2 + $0x198] sm:$0xff] }
  0x25   :  { %207 = vmatpush.msra.mxu0 %v171_v54  ;;  %v109_v6 = vadd.f32 %v108_v0, %v625_v61  ;;  %v144_v31 = vadd.f32 %v143_v21, %v646_v17  ;;  %891 = vst [vmem:[#allocation16_spill] sm:$0xff] %v682_v60  ;;  %v685_v0 = vld [vmem:[#allocation2 + $0xc8] sm:$0xff] }
  0x27   :  { %v110_v13 = vadd.f32 %v109_v6, %v631_v1  ;;  %v145_v38 = vadd.f32 %v144_v31, %v652_v26  ;;  %v688_v6 = vld [vmem:[#allocation2 + $0x1a0] sm:$0xff] }
  0x28   :  { %892 = vst [vmem:[#allocation17_spill] sm:$0xff] %v688_v6 }
  0x29   :  { %v111_v19 = vadd.f32 %v110_v13, %v637_v8  ;;  %v146_v44 = vadd.f32 %v145_v38, %v658_v33  ;;  %v691_v13 = vld [vmem:[#allocation2 + $0xd0] sm:$0xff] }
  0x2b   :  { %v112_v28 = vadd.f32 %v111_v19, %v643_v14  ;;  %v147_v51 = vadd.f32 %v146_v44, %v664_v39  ;;  %v694_v19 = vld [vmem:[#allocation2 + $0x1a8] sm:$0xff] }
  0x2c   :  { %893 = vst [vmem:[#allocation18_spill] sm:$0xff] %v694_v19 }
  0x2d   :  { %v113_v34 = vadd.f32 %v112_v28, %v649_v20  ;;  %v148_v58 = vadd.f32 %v147_v51, %v670_v46  ;;  %v697_v28 = vld [vmem:[#allocation2 + $0xd8] sm:$0xff] }
  0x2f   :  { %v114_v41 = vadd.f32 %v113_v34, %v655_v29  ;;  %v149_v2 = vadd.f32 %v148_v58, %v676_v53  ;;  %v700_v34 = vld [vmem:[#allocation2 + $0x1b0] sm:$0xff]  ;;  %v738_v53 = vld [vmem:[#allocation2 + $0x1e0] sm:$0xff] }
  0x30   :  { %894 = vst [vmem:[#allocation19_spill] sm:$0xff] %v700_v34 }
  0x31   :  { %v115_v48 = vadd.f32 %v114_v41, %v661_v36  ;;  %v150_v16 = vadd.f32 %v149_v2, %v682_v60  ;;  %v703_v41 = vld [vmem:[#allocation2 + $0xe0] sm:$0xff]  ;;  %900 = vst [vmem:[#allocation25_spill] sm:$0xff] %v738_v53 }
  0x33   :  { %v116_v54 = vadd.f32 %v115_v48, %v667_v43  ;;  %v151_v31 = vadd.f32 %v150_v16, %v688_v6  ;;  %v706_v48 = vld [vmem:[#allocation2 + $0x1b8] sm:$0xff] }
  0x34   :  { %895 = vst [vmem:[#allocation20_spill] sm:$0xff] %v706_v48 }
  0x35   :  { %v117_v62 = vadd.f32 %v116_v54, %v673_v49  ;;  %v152_v44 = vadd.f32 %v151_v31, %v694_v19  ;;  %v709_v54 = vld [vmem:[#allocation2 + $0xe8] sm:$0xff]  ;;  %v730_v19 = vld [vmem:[#allocation2 + $0x1d0] sm:$0xff] }
  0x36   :  { %898 = vst [vmem:[#allocation23_spill] sm:$0xff] %v730_v19 }
  0x37   :  { %v118_v10 = vadd.f32 %v117_v62, %v679_v56  ;;  %v153_v58 = vadd.f32 %v152_v44, %v700_v34  ;;  %v712_v62 = vld [vmem:[#allocation2 + $0x1c0] sm:$0xff]  ;;  %v215_v44 = vld [vmem:[%s863_s2 + $0x10] sm:$0xff]  ;;  %v727_v34 = vld [vmem:[#allocation2 + $0xf8] sm:$0xff] }
  0x38   :  { %896 = vst [vmem:[#allocation21_spill] sm:$0xff] %v712_v62 }
  0x39   :  { %v119_v21 = vadd.f32 %v118_v10, %v685_v0  ;;  %v715_v10 = vld [vmem:[#allocation2 + $0xf0] sm:$0xff]  ;;  %v154_v16 = vadd.f32 %v153_v58, %v706_v48 }
  0x3b   :  { %v120_v38 = vadd.f32 %v119_v21, %v691_v13  ;;  %v718_v21 = vld [vmem:[#allocation2 + $0x1c8] sm:$0xff] }
  0x3c   :  { %897 = vst [vmem:[#allocation22_spill] sm:$0xff] %v718_v21 }
  0x3d   :  { %v121_v51 = vadd.f32 %v120_v38, %v697_v28  ;;  %v216_v38 = vld [vmem:[%s863_s2 + $0x18] sm:$0xff] }
  0x3e   :  { %233 = vmatpush.msra.mxu1 %v216_v38 }
  0x3f   :  { %v122_v2 = vadd.f32 %v121_v51, %v703_v41  ;;  %v155_v51 = vadd.f32 %v154_v16, %v712_v62  ;;  %v741_v16 = vld [vmem:[#allocation2 + $0x1e8] sm:$0xff] }
  0x40   :  { %234 = vmatpush.msra.mxu1 %v215_v44 }
  0x41   :  { %v123_v31 = vadd.f32 %v122_v2, %v709_v54  ;;  %v156_v48 = vadd.f32 %v155_v51, %v718_v21  ;;  %v734_v2 = vld [vmem:[#allocation2 + $0x1d8] sm:$0xff] }
  0x42   :  { %899 = vst [vmem:[#allocation24_spill] sm:$0xff] %v734_v2  ;;  %v747_v21 = vld [vmem:[#allocation2 + $0x1f8] sm:$0xff] }
  0x43   :  { %v124_v58 = vadd.f32 %v123_v31, %v715_v10  ;;  %v157_v60 = vadd.f32 %v156_v48, %v730_v19  ;;  %v744_v31 = vld [vmem:[#allocation2 + $0x1f0] sm:$0xff] }
  0x45   :  { %v125_v6 = vadd.f32 %v124_v58, %v727_v34  ;;  %v158_v39 = vadd.f32 %v157_v60, %v734_v2 }
  0x47   :  { %v126_v46 = vrot.slane %v125_v6, 4  ;;  %v159_v62 = vadd.f32 %v158_v39, %v738_v53 }
  0x49   :  { %v127_v38 = vadd.f32 %v126_v46, %v125_v6  ;;  %v160_v44 = vadd.f32 %v159_v62, %v741_v16  ;;  %v214_v62 = vld [vmem:[%s863_s2 + $0x8] sm:$0xff] }
  0x4a   :  { %235 = vmatpush.msra.mxu1 %v214_v62 }
  0x4b   :  { %v128_v51 = vrot.slane %v127_v38, 2  ;;  %v161_v58 = vadd.f32 %v160_v44, %v744_v31 }
  0x4d   :  { %v129_v48 = vadd.f32 %v128_v51, %v127_v38  ;;  %v162_v19 = vadd.f32 %v161_v58, %v747_v21  ;;  %v213_v38 = vld [vmem:[%s863_s2] sm:$0xff]  ;;  %s478_s2 = smov [#allocation5]  }
  0x4e   :  { %236 = vmatpush.msra.mxu1 %v213_v38  ;;  %s398_s4 = sshll.u32 %s478_s2, 4  ;;  %s399_s4 = int_to_ptr.vmem [resolvable:$true] %s398_s4 }
  0x4f   :  { %v163_v33 = vrot.slane %v162_v19, 4  ;;  %v130_v26 = vrot.slane %v129_v48, 1 }
  0x51   :  { %v164_v60 = vadd.f32 %v163_v33, %v162_v19  ;;  %v131_v17 = vadd.f32 %v130_v26, %v129_v48 }
  0x53   :  { %v165_v2 = vrot.slane %v164_v60, 2  ;;  %v169_v53 = vmul.f32 0.00390625, %v131_v17 }
  0x55   :  { %v166_v46 = vadd.f32 %v165_v2, %v164_v60 }
  0x57   :  { %v167_v6 = vrot.slane %v166_v46, 1 }
  0x59   :  { %v168_v39 = vadd.f32 %v167_v6, %v166_v46 }
  0x5b   :  { %v170_v11 = vmul.f32 0.00390625, %v168_v39 }
  0x5d   :  { %v190_v3 = vsel %vm189_vm0, %v170_v11, %v169_v53 }
  0x5e   :  { %208 = vmatmul.f32.vlgmr.msra.gmra.mxu0 %v190_v3 }
  0xdb   :  { %v209_v33 = vpop.f32.mrf.mxu0 }
  0xdc   :  { %v212_v26 = vmax.f32 %v209_v33, 0.0 }
  0xde   :  { %413 = vmatmul.msk.f32.vlgmr.msra.gmra.mxu1 %vm217_vm1, %v212_v26 }
 0x15b   :  { %v238_v19 = vpop.f32.mrf.mxu1 }
 0x15c   :  { %v414_v17 = vmul.f32 -1.442695, %v238_v19 }
 0x15e   :  { %419 = vpow2.f32 %v414_v17 }
 0x164   :  { %v420_v2 = vpop.eup %419 }
 0x165   :  { %v244_v11 = vadd.f32 1.0, %v420_v2 }
 0x167   :  { %421 = vrcp.f32 %v244_v11  ;;  %v256_v44 = vand.u32 2147483648, %v244_v11  ;;  %v254_v48 = vand.u32 2147483647, %v244_v11  ;;  %vm250_vm3 = vweird.f32 %v244_v11 }
 0x169   :  { %v257_v46 = vor.u32 1.1754944e-38, %v256_v44  ;;  %vm255_vm5 = vcmp.eq.f32.partialorder %v254_v48, 8.507059e+37  ;;  %v904_v44 = vld [vmem:[#allocation11_spill] sm:$0xff]  ;;  %v906_v48 = vld [vmem:[#allocation13_spill] sm:$0xff] }
 0x16d   :  { %v422_v3 = vpop.eup %421 }
 0x16e   :  { %v246_v53 = vmul.f32 %v422_v3, %v244_v11  ;;  %vm251_vm2 = vweird.f32 %v422_v3 }
 0x16f   :  { %vm252_vm4 = vmor %vm250_vm3, %vm251_vm2 }
 0x170   :  { %v247_v51 = vsub.f32 1.0, %v246_v53  ;;  %v902_v53 = vld [vmem:[#allocation9_spill] sm:$0xff] }
 0x172   :  { %v248_v58 = vmul.f32 %v422_v3, %v247_v51  ;;  %v903_v51 = vld [vmem:[#allocation10_spill] sm:$0xff] }
 0x174   :  { %v249_v60 = vadd.f32 %v422_v3, %v248_v58  ;;  %v905_v58 = vld [vmem:[#allocation12_spill] sm:$0xff] }
 0x176   :  { %v253_v6 = vsel %vm252_vm4, %v422_v3, %v249_v60 }
 0x177   :  { %v258_v39 = vsel %vm255_vm5, %v257_v46, %v253_v6  ;;  %v907_v46 = vld [vmem:[#allocation14_spill] sm:$0xff] }
 0x178   :  { %v262_v62 = vperm.slane %v258_v39, 0 }
 0x17a   :  { %v266_v38 = vmul.f32 %v262_v62, %v517_v4  ;;  %v267_v33 = vmul.f32 %v262_v62, %v519_v5  ;;  %v268_v26 = vmul.f32 %v262_v62, %v524_v7  ;;  %v269_v19 = vmul.f32 %v262_v62, %v528_v9 }
 0x17b   :  { %v270_v17 = vmul.f32 %v262_v62, %v534_v12  ;;  %v271_v2 = vmul.f32 %v262_v62, %v540_v15  ;;  %v272_v11 = vmul.f32 %v262_v62, %v546_v18  ;;  %v273_v3 = vmul.f32 %v262_v62, %v555_v22 }
 0x17c   :  { %330 = vst [vmem:[#allocation5] sm:$0xff] %v266_v38  ;;  %v274_v4 = vmul.f32 %v262_v62, %v564_v27  ;;  %v275_v5 = vmul.f32 %v262_v62, %v574_v32  ;;  %v276_v7 = vmul.f32 %v262_v62, %v583_v37  ;;  %v277_v9 = vmul.f32 %v262_v62, %v592_v42  ;;  %v909_v38 = vld [vmem:[#allocation16_spill] sm:$0xff] }
 0x17d   :  { %331 = vst [vmem:[#allocation5 + $0x8] sm:$0xff] %v267_v33  ;;  %v278_v12 = vmul.f32 %v262_v62, %v601_v47  ;;  %v279_v15 = vmul.f32 %v262_v62, %v610_v52  ;;  %v280_v18 = vmul.f32 %v262_v62, %v619_v57  ;;  %v281_v22 = vmul.f32 %v262_v62, %v625_v61 }
 0x17e   :  { %332 = vst [vmem:[#allocation5 + $0x10] sm:$0xff] %v268_v26  ;;  %v282_v27 = vmul.f32 %v262_v62, %v631_v1  ;;  %v283_v32 = vmul.f32 %v262_v62, %v637_v8  ;;  %v284_v37 = vmul.f32 %v262_v62, %v643_v14  ;;  %v285_v42 = vmul.f32 %v262_v62, %v649_v20  ;;  %v910_v26 = vld [vmem:[#allocation17_spill] sm:$0xff] }
 0x17f   :  { %333 = vst [vmem:[#allocation5 + $0x18] sm:$0xff] %v269_v19  ;;  %v286_v47 = vmul.f32 %v262_v62, %v655_v29  ;;  %v287_v52 = vmul.f32 %v262_v62, %v661_v36  ;;  %v288_v57 = vmul.f32 %v262_v62, %v667_v43  ;;  %v289_v61 = vmul.f32 %v262_v62, %v673_v49 }
 0x180   :  { %334 = vst [vmem:[#allocation5 + $0x20] sm:$0xff] %v270_v17  ;;  %v261_v1 = vrot.slane %v258_v39, 1  ;;  %v290_v8 = vmul.f32 %v262_v62, %v679_v56  ;;  %v291_v14 = vmul.f32 %v262_v62, %v685_v0  ;;  %v292_v20 = vmul.f32 %v262_v62, %v691_v13  ;;  %v908_v39 = vld [vmem:[#allocation15_spill] sm:$0xff]  ;;  %v911_v17 = vld [vmem:[#allocation18_spill] sm:$0xff] }
 0x181   :  { %335 = vst [vmem:[#allocation5 + $0x28] sm:$0xff] %v271_v2  ;;  %v293_v29 = vmul.f32 %v262_v62, %v697_v28  ;;  %v294_v43 = vmul.f32 %v262_v62, %v703_v41  ;;  %v295_v49 = vmul.f32 %v262_v62, %v709_v54  ;;  %v296_v56 = vmul.f32 %v262_v62, %v715_v10  ;;  %v901_v10 = vld [vmem:[#allocation8_spill] sm:$0xff] }
 0x182   :  { %336 = vst [vmem:[#allocation5 + $0x30] sm:$0xff] %v272_v11  ;;  %v785_v36 = vperm.slane %v261_v1, 0  ;;  %v297_v0 = vmul.f32 %v262_v62, %v727_v34  ;;  %v912_v11 = vld [vmem:[#allocation19_spill] sm:$0xff] }
 0x183   :  { %337 = vst [vmem:[#allocation5 + $0x38] sm:$0xff] %v273_v3 }
 0x184   :  { %338 = vst [vmem:[#allocation5 + $0x40] sm:$0xff] %v274_v4  ;;  %v298_v13 = vmul.f32 %v785_v36, %v557_v23  ;;  %v299_v28 = vmul.f32 %v785_v36, %v559_v24  ;;  %v300_v41 = vmul.f32 %v785_v36, %v561_v25  ;;  %v301_v54 = vmul.f32 %v785_v36, %v571_v30  ;;  %v913_v4 = vld [vmem:[#allocation20_spill] sm:$0xff] }
 0x185   :  { %339 = vst [vmem:[#allocation5 + $0x48] sm:$0xff] %v275_v5  ;;  %v302_v34 = vmul.f32 %v785_v36, %v580_v35  ;;  %v303_v23 = vmul.f32 %v785_v36, %v589_v40  ;;  %v304_v24 = vmul.f32 %v785_v36, %v598_v45  ;;  %v305_v25 = vmul.f32 %v785_v36, %v607_v50 }
 0x186   :  { %340 = vst [vmem:[#allocation5 + $0x50] sm:$0xff] %v276_v7  ;;  %v306_v30 = vmul.f32 %v785_v36, %v616_v55  ;;  %v307_v35 = vmul.f32 %v785_v36, %v622_v59  ;;  %v308_v40 = vmul.f32 %v785_v36, %v628_v63  ;;  %v309_v45 = vmul.f32 %v785_v36, %v901_v10  ;;  %v914_v7 = vld [vmem:[#allocation21_spill] sm:$0xff] }
 0x187   :  { %341 = vst [vmem:[#allocation5 + $0x58] sm:$0xff] %v277_v9  ;;  %v310_v50 = vmul.f32 %v785_v36, %v902_v53  ;;  %v311_v55 = vmul.f32 %v785_v36, %v903_v51  ;;  %v312_v59 = vmul.f32 %v785_v36, %v904_v44  ;;  %v313_v63 = vmul.f32 %v785_v36, %v905_v58 }
 0x188   :  { %342 = vst [vmem:[#allocation5 + $0x60] sm:$0xff] %v278_v12  ;;  %v314_v60 = vmul.f32 %v785_v36, %v906_v48  ;;  %v315_v6 = vmul.f32 %v785_v36, %v907_v46  ;;  %v316_v62 = vmul.f32 %v785_v36, %v908_v39  ;;  %v317_v33 = vmul.f32 %v785_v36, %v909_v38  ;;  %v915_v12 = vld [vmem:[#allocation22_spill] sm:$0xff] }
 0x189   :  { %343 = vst [vmem:[#allocation5 + $0x68] sm:$0xff] %v279_v15  ;;  %v318_v19 = vmul.f32 %v785_v36, %v910_v26  ;;  %v319_v2 = vmul.f32 %v785_v36, %v911_v17  ;;  %v320_v3 = vmul.f32 %v785_v36, %v912_v11  ;;  %v321_v5 = vmul.f32 %v785_v36, %v913_v4 }
 0x18a   :  { %344 = vst [vmem:[#allocation5 + $0x70] sm:$0xff] %v280_v18  ;;  %v322_v9 = vmul.f32 %v785_v36, %v914_v7  ;;  %v323_v15 = vmul.f32 %v785_v36, %v915_v12  ;;  %v916_v18 = vld [vmem:[#allocation23_spill] sm:$0xff] }
 0x18b   :  { %345 = vst [vmem:[#allocation5 + $0x78] sm:$0xff] %v281_v22  ;;  %v324_v22 = vmul.f32 %v785_v36, %v916_v18 }
 0x18c   :  { %346 = vst [vmem:[#allocation5 + $0x80] sm:$0xff] %v282_v27  ;;  %v917_v27 = vld [vmem:[#allocation24_spill] sm:$0xff] }
 0x18d   :  { %347 = vst [vmem:[#allocation5 + $0x88] sm:$0xff] %v283_v32  ;;  %v325_v32 = vmul.f32 %v785_v36, %v917_v27 }
 0x18e   :  { %348 = vst [vmem:[#allocation5 + $0x90] sm:$0xff] %v284_v37  ;;  %v918_v37 = vld [vmem:[#allocation25_spill] sm:$0xff] }
 0x18f   :  { %349 = vst [vmem:[#allocation5 + $0x98] sm:$0xff] %v285_v42  ;;  %v326_v42 = vmul.f32 %v785_v36, %v918_v37 }
 0x190   :  { %350 = vst [vmem:[#allocation5 + $0xa0] sm:$0xff] %v286_v47  ;;  %v327_v47 = vmul.f32 %v785_v36, %v741_v16 }
 0x191   :  { %351 = vst [vmem:[#allocation5 + $0xa8] sm:$0xff] %v287_v52  ;;  %v328_v52 = vmul.f32 %v785_v36, %v744_v31 }
 0x192   :  { %352 = vst [vmem:[#allocation5 + $0xb0] sm:$0xff] %v288_v57  ;;  %v329_v57 = vmul.f32 %v785_v36, %v747_v21 }
 0x193   :  { %353 = vst [vmem:[#allocation5 + $0xb8] sm:$0xff] %v289_v61 }
 0x194   :  { %354 = vst [vmem:[#allocation5 + $0xc0] sm:$0xff] %v290_v8 }
 0x195   :  { %355 = vst [vmem:[#allocation5 + $0xc8] sm:$0xff] %v291_v14 }
 0x196   :  { %356 = vst [vmem:[#allocation5 + $0xd0] sm:$0xff] %v292_v20 }
 0x197   :  { %357 = vst [vmem:[#allocation5 + $0xd8] sm:$0xff] %v293_v29 }
 0x198   :  { %358 = vst [vmem:[#allocation5 + $0xe0] sm:$0xff] %v294_v43 }
 0x199   :  { %359 = vst [vmem:[#allocation5 + $0xe8] sm:$0xff] %v295_v49 }
 0x19a   :  { %360 = vst [vmem:[#allocation5 + $0xf0] sm:$0xff] %v296_v56 }
 0x19b   :  { %361 = vst [vmem:[#allocation5 + $0xf8] sm:$0xff] %v297_v0 }
 0x19c   :  { %362 = vst [vmem:[#allocation5 + $0x100] sm:$0xff] %v298_v13 }
 0x19d   :  { %363 = vst [vmem:[#allocation5 + $0x108] sm:$0xff] %v299_v28 }
 0x19e   :  { %364 = vst [vmem:[#allocation5 + $0x110] sm:$0xff] %v300_v41 }
 0x19f   :  { %365 = vst [vmem:[#allocation5 + $0x118] sm:$0xff] %v301_v54 }
 0x1a0   :  { %366 = vst [vmem:[#allocation5 + $0x120] sm:$0xff] %v302_v34 }
 0x1a1   :  { %367 = vst [vmem:[#allocation5 + $0x128] sm:$0xff] %v303_v23 }
 0x1a2   :  { %368 = vst [vmem:[#allocation5 + $0x130] sm:$0xff] %v304_v24 }
 0x1a3   :  { %369 = vst [vmem:[#allocation5 + $0x138] sm:$0xff] %v305_v25 }
 0x1a4   :  { %370 = vst [vmem:[#allocation5 + $0x140] sm:$0xff] %v306_v30 }
 0x1a5   :  { %371 = vst [vmem:[#allocation5 + $0x148] sm:$0xff] %v307_v35 }
 0x1a6   :  { %372 = vst [vmem:[#allocation5 + $0x150] sm:$0xff] %v308_v40 }
 0x1a7   :  { %373 = vst [vmem:[#allocation5 + $0x158] sm:$0xff] %v309_v45 }
 0x1a8   :  { %374 = vst [vmem:[#allocation5 + $0x160] sm:$0xff] %v310_v50 }
 0x1a9   :  { %375 = vst [vmem:[#allocation5 + $0x168] sm:$0xff] %v311_v55 }
 0x1aa   :  { %376 = vst [vmem:[#allocation5 + $0x170] sm:$0xff] %v312_v59 }
 0x1ab   :  { %377 = vst [vmem:[#allocation5 + $0x178] sm:$0xff] %v313_v63 }
 0x1ac   :  { %378 = vst [vmem:[#allocation5 + $0x180] sm:$0xff] %v314_v60 }
 0x1ad   :  { %379 = vst [vmem:[#allocation5 + $0x188] sm:$0xff] %v315_v6 }
 0x1ae   :  { %380 = vst [vmem:[#allocation5 + $0x190] sm:$0xff] %v316_v62 }
 0x1af   :  { %381 = vst [vmem:[#allocation5 + $0x198] sm:$0xff] %v317_v33 }
 0x1b0   :  { %382 = vst [vmem:[#allocation5 + $0x1a0] sm:$0xff] %v318_v19 }
 0x1b1   :  { %383 = vst [vmem:[#allocation5 + $0x1a8] sm:$0xff] %v319_v2 }
 0x1b2   :  { %384 = vst [vmem:[#allocation5 + $0x1b0] sm:$0xff] %v320_v3 }
 0x1b3   :  { %385 = vst [vmem:[#allocation5 + $0x1b8] sm:$0xff] %v321_v5 }
 0x1b4   :  { %386 = vst [vmem:[#allocation5 + $0x1c0] sm:$0xff] %v322_v9 }
 0x1b5   :  { %387 = vst [vmem:[#allocation5 + $0x1c8] sm:$0xff] %v323_v15 }
 0x1b6   :  { %388 = vst [vmem:[#allocation5 + $0x1d0] sm:$0xff] %v324_v22 }
 0x1b7   :  { %389 = vst [vmem:[#allocation5 + $0x1d8] sm:$0xff] %v325_v32 }
 0x1b8   :  { %390 = vst [vmem:[#allocation5 + $0x1e0] sm:$0xff] %v326_v42 }
 0x1b9   :  { %391 = vst [vmem:[#allocation5 + $0x1e8] sm:$0xff] %v327_v47 }
 0x1ba   :  { %392 = vst [vmem:[#allocation5 + $0x1f0] sm:$0xff] %v328_v52 }
 0x1bb   :  { %393 = vst [vmem:[#allocation5 + $0x1f8] sm:$0xff] %v329_v57 }
 0x1bc   :  { %406 = dma.vmem_to_hbm [thread:$0]  %s399_s4, 8192, %s401_s7, [#allocation4], %s476_s17, %s476_s17, %s477_s18  }
 0x1bd   :  { %473 = dma.done.wait [#allocation4], 8192  }
 0x1be   :  { %474 = vsyncadd [#allocation4], 4294959104 }
 0x1bf   :  { %411 = vsyncpa [#allocation3], 1 }
 0x1c0   :  { %412 = vsyncpa [#allocation4], 1 }

</bundles_post_ra>
